<compile_context>
chip_gen: v5e
topology: v5e:2x2
jax: 0.10.0
libtpu: 0.0.40
codegen_flags: <defaults>
</compile_context>

<pallas_src>
import functools
import numpy as np
import jax
import jax.numpy as jnp
from jax.experimental import pallas as pl
from jax.experimental.pallas import tpu as pltpu

LANES = 128                 # lane width (last dim of every block)
DEFAULT_BLOCK_ROWS = 2048   # 2048*128*4B = 1 MiB f32 per input block (2 MiB double-buffered)


def _gan_partial_sum_kernel(x_ref, out_ref, *, mode, tval, sign, total,
                            block_rows, needs_mask):
    x = x_ref[...].astype(jnp.float32)

    if mode == "identity":
        f = x
    elif mode == "bce":
        # numerically stable BCEWithLogits vs constant target tval:
        #   softplus(x) - tval*x == max(x,0) - tval*x + log(1 + exp(-|x|))
        f = jnp.maximum(x, 0.0) - tval * x + jnp.log(1.0 + jnp.exp(-jnp.abs(x)))
    elif mode == "mse":
        d = x - tval
        f = d * d
    elif mode == "softplus":
        z = sign * x
        f = jnp.maximum(z, 0.0) + jnp.log(1.0 + jnp.exp(-jnp.abs(z)))
    elif mode == "hinge":
        f = jnp.maximum(1.0 + sign * x, 0.0)
    else:
        raise ValueError(f"unsupported mode: {mode}")

    if needs_mask:
        # Zero out padded tail elements; `total` is a compile-time constant.
        row0 = pl.program_id(0) * block_rows
        ridx = jax.lax.broadcasted_iota(jnp.int32, x.shape, 0) + row0
        lidx = jax.lax.broadcasted_iota(jnp.int32, x.shape, 1)
        f = jnp.where(ridx * LANES + lidx < total, f, 0.0)

    # Per-block partial sums reduced over sublanes only -> full 128-lane row
    # (lane-dense, unmasked store).  Cross-lane reduce + 1/N happen outside.
    out_ref[...] = jnp.sum(f, axis=0, keepdims=True)[None]


def gan_loss_pallas(x, gan_type, target_is_real, is_disc=False,
                    real_label_val=1.0, fake_label_val=0.0, loss_weight=1.0,
                    block_rows=DEFAULT_BLOCK_ROWS):
    """Forward pass of GANLoss(gan_type, ...) on TPU. Returns a scalar loss."""
    outer_sign = 1.0
    inner_sign = 1.0
    tval = 0.0
    if gan_type == "vanilla":
        mode = "bce"
        tval = real_label_val if target_is_real else fake_label_val
    elif gan_type == "lsgan":
        mode = "mse"
        tval = real_label_val if target_is_real else fake_label_val
    elif gan_type == "wgan":
        mode = "identity"
        outer_sign = -1.0 if target_is_real else 1.0
    elif gan_type == "wgan_softplus":
        mode = "softplus"
        inner_sign = -1.0 if target_is_real else 1.0
    elif gan_type == "hinge":
        if is_disc:
            mode = "hinge"
            inner_sign = -1.0 if target_is_real else 1.0
        else:
            mode = "identity"
            outer_sign = -1.0
    elif gan_type == "standard":
        mode = "identity"
        if is_disc:
            outer_sign = -1.0 if target_is_real else 1.0
        else:
            outer_sign = -1.0
    else:
        raise NotImplementedError(f"GAN type {gan_type} is not implemented.")

    total = int(np.prod(x.shape))
    # lane-dense layout: flatten, pad, reshape to (rows, 128)
    rows = -(-total // LANES)
    rows = -(-rows // 8) * 8                    # sublane multiple
    br = int(min(block_rows, rows))
    br = max(8, (br // 8) * 8)
    rows = -(-rows // br) * br                  # whole number of blocks
    grid_n = rows // br
    pad = rows * LANES - total

    xf = x.reshape(-1)
    if pad:
        xf = jnp.pad(xf, (0, pad))
    x2 = xf.reshape(rows, LANES)

    kernel = functools.partial(
        _gan_partial_sum_kernel, mode=mode, tval=float(tval),
        sign=float(inner_sign), total=total, block_rows=br,
        needs_mask=(pad != 0))

    partial = pl.pallas_call(
        kernel,
        out_shape=jax.ShapeDtypeStruct((grid_n, 1, LANES), jnp.float32),
        grid=(grid_n,),
        in_specs=[pl.BlockSpec((br, LANES), lambda i: (i, 0))],
        out_specs=pl.BlockSpec((1, 1, LANES), lambda i: (i, 0, 0)),
        compiler_params=pltpu.CompilerParams(
            dimension_semantics=("parallel",)),
    )(x2)

    loss = outer_sign * (jnp.sum(partial) / total)
    if not is_disc:
        loss = loss * loss_weight
    return loss


# ----- pure-numpy reference (same math as the PyTorch GANLoss.forward) -----
def _softplus_np(z):
    return np.maximum(z, 0.0) + np.log1p(np.exp(-np.abs(z)))


def gan_loss_ref(x, gan_type, target_is_real, is_disc=False,
                 real_label_val=1.0, fake_label_val=0.0, loss_weight=1.0):
    x = np.asarray(x, dtype=np.float64)
    if gan_type == "vanilla":
        t = real_label_val if target_is_real else fake_label_val
        loss = np.mean(_softplus_np(x) - t * x)
    elif gan_type == "lsgan":
        t = real_label_val if target_is_real else fake_label_val
        loss = np.mean((x - t) ** 2)
    elif gan_type == "wgan":
        loss = -x.mean() if target_is_real else x.mean()
    elif gan_type == "wgan_softplus":
        loss = _softplus_np(-x).mean() if target_is_real else _softplus_np(x).mean()
    elif gan_type == "hinge":
        if is_disc:
            xi = -x if target_is_real else x
            loss = np.maximum(1.0 + xi, 0.0).mean()
        else:
            loss = -x.mean()
    elif gan_type == "standard":
        if is_disc:
            loss = -x.mean() if target_is_real else x.mean()
        else:
            loss = -x.mean()
    else:
        raise NotImplementedError(gan_type)
    return loss if is_disc else loss * loss_weight


if __name__ == "__main__":
    key = jax.random.PRNGKey(0)
    # discriminator prediction logits, NCHW
    x = jax.random.normal(key, (2, 4, 16, 16), dtype=jnp.float32)
    x_np = np.asarray(x)

    cases = [
        # (gan_type, target_is_real, is_disc, loss_weight)
        ("vanilla",       True,  False, 0.5),
        ("vanilla",       False, True,  0.5),
        ("lsgan",         True,  False, 2.0),
        ("lsgan",         False, True,  2.0),
        ("wgan",          True,  True,  1.0),
        ("wgan",          False, False, 0.25),
        ("wgan_softplus", True,  True,  1.0),
        ("wgan_softplus", False, False, 1.0),
        ("hinge",         True,  True,  1.0),
        ("hinge",         False, True,  1.0),
        ("hinge",         True,  False, 3.0),
        ("standard",      True,  True,  1.0),
        ("standard",      False, True,  1.0),
        ("standard",      True,  False, 0.7),
    ]

    for gan_type, real, is_disc, w in cases:
        out = gan_loss_pallas(x, gan_type, real, is_disc=is_disc, loss_weight=w)
        out = float(jax.block_until_ready(out))
        ref = float(gan_loss_ref(x_np, gan_type, real, is_disc=is_disc, loss_weight=w))
        assert abs(out - ref) < 1e-4 + 1e-4 * abs(ref), \
            (gan_type, real, is_disc, out, ref)

    print("KERNEL_OK")
</pallas_src>

<mosaic_0001>
module attributes {stable_mosaic.version = 11 : i64} {
  func.func @_gan_partial_sum_kernel(%arg0: i32, %arg1: memref<16x128xf32, #tpu.memory_space<vmem>>, %arg2: memref<1x1x128xf32, #tpu.memory_space<vmem>>) attributes {dimension_semantics = [#tpu.dimension_semantics<parallel>], iteration_bounds = array<i64: 1>, scalar_prefetch = 0 : i64, scratch_operands = 0 : i64, tpu.core_type = #tpu.core_type<tc>, window_params = [{transform_indices = @transform_0, window_bounds = array<i64: 16, 128>}, {transform_indices = @transform_1, window_bounds = array<i64: 1, 1, 128>}]} {
    %c0 = arith.constant 0 : index
    %c0_0 = arith.constant 0 : index
    %0 = vector.load %arg1[%c0, %c0_0] : memref<16x128xf32, #tpu.memory_space<vmem>>, vector<16x128xf32>
    %cst = arith.constant 0.000000e+00 : f32
    %1 = vector.broadcast %cst : f32 to vector<16x128xf32>
    %2 = arith.maximumf %0, %1 : vector<16x128xf32>
    %cst_1 = arith.constant 1.000000e+00 : f32
    %3 = vector.broadcast %cst_1 : f32 to vector<16x128xf32>
    %4 = arith.mulf %3, %0 : vector<16x128xf32>
    %5 = arith.subf %2, %4 : vector<16x128xf32>
    %6 = math.absf %0 : vector<16x128xf32>
    %cst_2 = arith.constant 0.000000e+00 : f32
    %7 = vector.broadcast %cst_2 : f32 to vector<16x128xf32>
    %8 = arith.subf %7, %6 : vector<16x128xf32>
    %9 = math.exp %8 : vector<16x128xf32>
    %cst_3 = arith.constant 1.000000e+00 : f32
    %10 = vector.broadcast %cst_3 : f32 to vector<16x128xf32>
    %11 = arith.addf %10, %9 : vector<16x128xf32>
    %12 = math.log %11 : vector<16x128xf32>
    %13 = arith.addf %5, %12 : vector<16x128xf32>
    %cst_4 = arith.constant dense<0.000000e+00> : vector<128xf32>
    %14 = vector.multi_reduction <add>, %13, %cst_4 [0] : vector<16x128xf32> to vector<128xf32>
    %15 = vector.shape_cast %14 : vector<128xf32> to vector<1x128xf32>
    %16 = vector.shape_cast %15 : vector<1x128xf32> to vector<1x1x128xf32>
    %c0_5 = arith.constant 0 : index
    %c0_6 = arith.constant 0 : index
    %c0_7 = arith.constant 0 : index
    %17 = vector.load %arg2[%c0_5, %c0_6, %c0_7] : memref<1x1x128xf32, #tpu.memory_space<vmem>>, vector<1x1x128xf32>
    tpu.vector_store %arg2[%c0_5, %c0_6, %c0_7], %16 {strides = array<i32>} : memref<1x1x128xf32, #tpu.memory_space<vmem>>, vector<1x1x128xf32>,
    return
  }
  func.func @transform_0(%arg0: i32) -> (i32, i32) {
    %c0_i32 = arith.constant 0 : i32
    %c0_i32_0 = arith.constant 0 : i32
    return %arg0, %c0_i32 : i32, i32
  }
  func.func @transform_1(%arg0: i32) -> (i32, i32, i32) {
    %c0_i32 = arith.constant 0 : i32
    %c0_i32_0 = arith.constant 0 : i32
    %c0_i32_1 = arith.constant 0 : i32
    return %arg0, %c0_i32, %c0_i32_0 : i32, i32, i32
  }
}

</mosaic_0001>

<bundles_post_ra>
// kernel: tpu_custom_call.1
= control target key start
LH: loop header
LB: loop body
LE: loop exit
PB: predicated region body
PF: predicated region fallthrough
CT: control target
= control target key end

     0   :  { %6 = vsyncpa [#allocation3], 0  ;;  %s156_s0 = inlined_call_operand.hbm [shape: f32[16,128], index: 0, kind: input, shape index: {}]   ;;  %s157_s1 = inlined_call_operand.hbm [shape: f32[1,1,128], index: 1, kind: output, shape index: {}]  }
   0x1   :  { %7 = vsyncpa [#allocation4], 0  ;;  %s12_s8 = sshll.u32 %s156_s0, 4  ;;  %s136_s9 = smov [#allocation2]   ;;  %s13_s8 = int_to_ptr.hbm [resolvable:$true] %s12_s8 }
   0x2   :  { %s14_s10 = sshll.u32 %s136_s9, 4  ;;  %s137_s11 = smov 128   ;;  %s15_s10 = int_to_ptr.vmem [resolvable:$true] %s14_s10 }
   0x3   :  { %s138_s12 = smov 8  }
   0x4   :  { %20 = dma.hbm_to_vmem [thread:$0]  %s13_s8, 256, %s15_s10, [#allocation3], %s137_s11, %s137_s11, %s138_s12  }
   0x5   :  { %132 = dma.done.wait [#allocation3], 256  }
   0x6   :  { %133 = vsyncadd [#allocation3], 4294967040  ;;  %v25_v0 = vld [vmem:[#allocation2] sm:$0xff]  ;;  %v26_v1 = vld [vmem:[#allocation2 + $0x8] sm:$0xff]  ;;  %s139_s0 = smov [#allocation5]   ;;  %s62_s16 = sshll.u32 %s157_s1, 4  ;;  %s63_s16 = int_to_ptr.hbm [resolvable:$true] %s62_s16 }
   0x7   :  { %v31_v2 = vand.u32 2147483647, %v25_v0  ;;  %v32_v3 = vand.u32 2147483647, %v26_v1  ;;  %v27_v12 = vmax.f32 %v25_v0, 0.0  ;;  %v28_v13 = vmax.f32 %v26_v1, 0.0 }
   0x8   :  { %s60_s13 = sshll.u32 %s139_s0, 4  ;;  %s61_s13 = int_to_ptr.vmem [resolvable:$true] %s60_s13 }
   0x9   :  { %v33_v4 = vsub.f32 0.0, %v31_v2  ;;  %v34_v5 = vsub.f32 0.0, %v32_v3  ;;  %v29_v14 = vsub.f32 %v27_v12, %v25_v0  ;;  %v30_v16 = vsub.f32 %v28_v13, %v26_v1 }
   0xb   :  { %v35_v6 = vmul.f32 1.442695, %v33_v4  ;;  %v37_v7 = vmul.f32 1.442695, %v34_v5 }
   0xd   :  { %76 = vpow2.f32 %v35_v6 }
   0xe   :  { %78 = vpow2.f32 %v37_v7 }
  0x13   :  { %v77_v8 = vpop.eup %76 }
  0x14   :  { %v79_v9 = vpop.eup %78  ;;  %v39_v10 = vadd.f32 1.0, %v77_v8 }
  0x15   :  { %v40_v11 = vadd.f32 1.0, %v79_v9 }
  0x16   :  { %80 = vlog2.f32 %v39_v10 }
  0x17   :  { %82 = vlog2.f32 %v40_v11 }
  0x1c   :  { %v81_v15 = vpop.eup %80 }
  0x1d   :  { %v83_v17 = vpop.eup %82  ;;  %v42_v18 = vmul.f32 0.6931472, %v81_v15 }
  0x1e   :  { %v44_v19 = vmul.f32 0.6931472, %v83_v17 }
  0x1f   :  { %v45_v20 = vadd.f32 %v42_v18, %v29_v14 }
  0x20   :  { %v46_v21 = vadd.f32 %v44_v19, %v30_v16 }
  0x22   :  { %v47_v22 = vadd.f32 %v46_v21, %v45_v20 }
  0x24   :  { %v48_v23 = vrot.slane %v47_v22, 4 }
  0x26   :  { %v49_v24 = vadd.f32 %v48_v23, %v47_v22 }
  0x28   :  { %v50_v25 = vrot.slane %v49_v24, 2 }
  0x2a   :  { %v51_v26 = vadd.f32 %v50_v25, %v49_v24 }
  0x2c   :  { %v52_v27 = vrot.slane %v51_v26, 1 }
  0x2e   :  { %v53_v28 = vadd.f32 %v52_v27, %v51_v26 }
  0x30   :  { %54 = vst [vmem:[#allocation5] sm:$0x1] %v53_v28 }
  0x31   :  { %65 = dma.vmem_to_hbm [thread:$0]  %s61_s13, 16, %s63_s16, [#allocation4]  }
  0x32   :  { %134 = dma.done.wait [#allocation4], 16  }
  0x33   :  { %135 = vsyncadd [#allocation4], 4294967280 }
  0x34   :  { %70 = vsyncpa [#allocation3], 1 }
  0x35   :  { %71 = vsyncpa [#allocation4], 1 }

</bundles_post_ra>
